<compile_context>
chip_gen: v7x
topology: tpu7x:2x2x1
jax: 0.10.0
libtpu: 0.0.40
codegen_flags: <defaults>
</compile_context>

<pallas_src>
import functools

import jax
import jax.numpy as jnp
from jax.experimental import pallas as pl
from jax.experimental.pallas import tpu as pltpu

LANE = 128


def _resblock_kernel(xb_ref, w_ref, b_ref, o_ref, slab_ref):
    # xb_ref : (1, th+2, W, Cp) bf16  row block + 1-row halo (zeros at image edges)
    # w_ref  : (3, 3*Cp, Cp)    bf16  BN-folded weight, [kh, kw*Cp + ci, co]
    # b_ref  : (1, Cp)          f32   BN-folded bias
    # o_ref  : (1, th, W, Cp)   bf16  output rows = x + relu(conv(x))
    # slab_ref: VMEM (th+2, W, 3*Cp) bf16 scratch: kw-shifted operands packed on C
    _, hpad, W, Cp = xb_ref.shape
    th = hpad - 2
    thW = th * W

    x = xb_ref[0]                                        # (th+2, W, Cp) bf16
    zero_col = jnp.zeros((hpad, 1, Cp), dtype=x.dtype)

    # Build the three kw-shifted slabs once (hoisted out of the kh loop).
    slab_ref[:, :, 1 * Cp:2 * Cp] = x                    # kw = 1 (center, aligned copy)
    slab_ref[:, 1:, 0 * Cp:1 * Cp] = x[:, :W - 1, :]     # kw = 0 (shift right)
    slab_ref[:, 0:1, 0 * Cp:1 * Cp] = zero_col
    slab_ref[:, :W - 1, 2 * Cp:3 * Cp] = x[:, 1:, :]     # kw = 2 (shift left)
    slab_ref[:, W - 1:W, 2 * Cp:3 * Cp] = zero_col

    # 3x3 conv = 3 MXU matmuls with fused contraction K = 3*Cp.
    acc = jnp.zeros((thW, Cp), dtype=jnp.float32)
    for kh in range(3):                                  # static unroll
        operand = slab_ref[kh:kh + th].reshape(thW, 3 * Cp)   # free row offset
        acc = acc + jnp.dot(operand, w_ref[kh],
                            preferred_element_type=jnp.float32)

    y = jnp.maximum(acc + b_ref[...], 0.0)               # conv + folded BN + ReLU (f32)

    # Residual from the center slab (no extra relayout / HBM read).
    # NOTE: residual carries bf16 rounding of x (matches bf16 output precision).
    x_res = slab_ref[1:th + 1, :, 1 * Cp:2 * Cp].reshape(thW, Cp).astype(jnp.float32)

    o_ref[...] = (x_res + y).astype(o_ref.dtype).reshape(1, th, W, Cp)


def _pick_row_block(H):
    if H <= 32:
        return H
    for th in (32, 28, 24, 16, 8):
        if H % th == 0:
            return th
    return H


@functools.partial(jax.jit, static_argnames=("eps", "row_block"))
def resblock_forward(x_nchw, conv_w, bn_gamma, bn_beta, bn_mean, bn_var,
                     eps=1e-5, row_block=None):
    """x_nchw: (N, C, H, W) f32. conv_w: (C, C, 3, 3) = (out, in, kh, kw)."""
    N, C, H, W = x_nchw.shape
    Cp = ((C + LANE - 1) // LANE) * LANE                 # lane-dense channel width
    th = row_block if row_block is not None else _pick_row_block(H)
    if H % th != 0:
        raise ValueError(f"row_block={th} must divide H={H}")
    nb = H // th

    # ---- fold inference BatchNorm into the conv weight / bias ----
    scale = bn_gamma / jnp.sqrt(bn_var + eps)                          # (C,)
    w = jnp.transpose(conv_w, (2, 3, 1, 0)) * scale[None, None, None, :]  # (kh,kw,ci,co)
    b = bn_beta - bn_mean * scale                                      # (C,)

    w_p = jnp.zeros((3, 3, Cp, Cp), jnp.float32).at[:, :, :C, :C].set(w)
    w_p = w_p.reshape(3, 3 * Cp, Cp).astype(jnp.bfloat16)  # [kh, kw*Cp + ci, co]
    b_p = jnp.zeros((1, Cp), jnp.float32).at[0, :C].set(b)

    # ---- single fused layout pre-pass: NCHW f32 -> halo'd row blocks, NHWC bf16 ----
    x_nhwc = jnp.transpose(x_nchw, (0, 2, 3, 1))                       # (N,H,W,C)
    x_hp = jnp.pad(x_nhwc, ((0, 0), (1, 1), (0, 0), (0, Cp - C))).astype(jnp.bfloat16)
    # overlapping row blocks with a 1-row halo on each side
    xb = jnp.concatenate(
        [x_hp[:, r * th:r * th + th + 2][:, None] for r in range(nb)], axis=1)
    xb = xb.reshape(N * nb, th + 2, W, Cp)                             # (N*nb,th+2,W,Cp)

    # advisory cost estimate for XLA scheduling around the custom call
    flops = 2 * N * H * W * 9 * Cp * Cp
    bytes_accessed = xb.size * 2 + w_p.size * 2 + b_p.size * 4 + N * H * W * Cp * 2

    # generation-aware-ish VMEM budget: sized to the tiles, capped for v7x (64 MiB)
    in_blk = (th + 2) * W * Cp * 2
    out_blk = th * W * Cp * 2
    slab_b = (th + 2) * W * 3 * Cp * 2
    per_step = 2 * in_blk + 2 * out_blk + 2 * (w_p.size * 2 + b_p.size * 4) \
        + slab_b + th * W * Cp * 4
    vmem_limit = int(min(64 * 1024 * 1024, max(32 * 1024 * 1024, 3 * per_step)))

    out = pl.pallas_call(
        _resblock_kernel,
        out_shape=jax.ShapeDtypeStruct((N * nb, th, W, Cp), jnp.bfloat16),
        grid_spec=pltpu.PrefetchScalarGridSpec(
            num_scalar_prefetch=0,
            grid=(N * nb,),
            in_specs=[
                pl.BlockSpec((1, th + 2, W, Cp), lambda i: (i, 0, 0, 0)),
                pl.BlockSpec((3, 3 * Cp, Cp), lambda i: (0, 0, 0)),   # weight (resident)
                pl.BlockSpec((1, Cp), lambda i: (0, 0)),              # bias   (resident)
            ],
            out_specs=pl.BlockSpec((1, th, W, Cp), lambda i: (i, 0, 0, 0)),
            scratch_shapes=[pltpu.VMEM((th + 2, W, 3 * Cp), jnp.bfloat16)],
        ),
        compiler_params=pltpu.CompilerParams(
            dimension_semantics=("parallel",),       # shards (image, row-block) across TCs
            vmem_limit_bytes=vmem_limit,
        ),
        cost_estimate=pl.CostEstimate(
            flops=flops, transcendentals=0, bytes_accessed=bytes_accessed),
    )(xb, w_p, b_p)

    out = out.reshape(N, H, W, Cp)[..., :C].astype(jnp.float32)   # drop channel padding
    return jnp.transpose(out, (0, 3, 1, 2))                       # back to NCHW


def _reference(x, conv_w, g, b, m, v, eps=1e-5):
    y = jax.lax.conv_general_dilated(
        x, conv_w, window_strides=(1, 1), padding=((1, 1), (1, 1)),
        dimension_numbers=("NCHW", "OIHW", "NCHW"))
    scale = (g / jnp.sqrt(v + eps))[None, :, None, None]
    shift = (b - m * g / jnp.sqrt(v + eps))[None, :, None, None]
    return x + jnp.maximum(y * scale + shift, 0.0)


if __name__ == "__main__":
    key = jax.random.PRNGKey(0)
    k_x, k_w, k_g, k_b, k_m, k_v = jax.random.split(key, 6)

    N, C, H, W = 2, 4, 16, 16
    x = jax.random.normal(k_x, (N, C, H, W), dtype=jnp.float32)

    # deterministic parameter init (Conv2d(nf, nf, 3, padding=1, bias=False) + BN)
    fan_in = C * 3 * 3
    conv_w = jax.random.normal(k_w, (C, C, 3, 3), dtype=jnp.float32) / jnp.sqrt(fan_in)
    bn_gamma = 1.0 + 0.1 * jax.random.normal(k_g, (C,), dtype=jnp.float32)
    bn_beta = 0.1 * jax.random.normal(k_b, (C,), dtype=jnp.float32)
    bn_mean = 0.1 * jax.random.normal(k_m, (C,), dtype=jnp.float32)
    bn_var = jnp.abs(jax.random.normal(k_v, (C,), dtype=jnp.float32)) + 0.5

    # row_block=8 -> 2 row blocks per image (exercises the halo stitching path)
    y = resblock_forward(x, conv_w, bn_gamma, bn_beta, bn_mean, bn_var, row_block=8)
    jax.block_until_ready(y)
    assert y.shape == (N, C, H, W)

    y_ref = _reference(x, conv_w, bn_gamma, bn_beta, bn_mean, bn_var)
    max_err = float(jnp.max(jnp.abs(y - y_ref)))
    assert max_err < 1e-1, f"max abs error vs reference: {max_err}"
    print("KERNEL_OK")
</pallas_src>

<mosaic_0001>
module attributes {stable_mosaic.version = 11 : i64} {
  func.func @_resblock_kernel(%arg0: i32, %arg1: memref<1x10x16x128xbf16, #tpu.memory_space<vmem>>, %arg2: memref<3x384x128xbf16, #tpu.memory_space<vmem>>, %arg3: memref<1x128xf32, #tpu.memory_space<vmem>>, %arg4: memref<1x8x16x128xbf16, #tpu.memory_space<vmem>>, %arg5: memref<10x16x384xbf16, #tpu.memory_space<vmem>>) attributes {dimension_semantics = [#tpu.dimension_semantics<parallel>], iteration_bounds = array<i64: 4>, scalar_prefetch = 0 : i64, scratch_operands = 1 : i64, tpu.core_type = #tpu.core_type<tc>, window_params = [{transform_indices = @transform_0, window_bounds = array<i64: 1, 10, 16, 128>}, {pipeline_mode = #tpu.pipeline_mode<synchronous>, transform_indices = @transform_1, window_bounds = array<i64: 3, 384, 128>}, {pipeline_mode = #tpu.pipeline_mode<synchronous>, transform_indices = @transform_2, window_bounds = array<i64: 1, 128>}, {transform_indices = @transform_3, window_bounds = array<i64: 1, 8, 16, 128>}]} {
    %c0 = arith.constant 0 : index
    %c0_0 = arith.constant 0 : index
    %c0_1 = arith.constant 0 : index
    %c0_2 = arith.constant 0 : index
    %0 = vector.load %arg1[%c0, %c0_0, %c0_1, %c0_2] : memref<1x10x16x128xbf16, #tpu.memory_space<vmem>>, vector<1x10x16x128xbf16>
    %1 = vector.shape_cast %0 : vector<1x10x16x128xbf16> to vector<10x16x128xbf16>
    %cst = arith.constant 0.000000e+00 : bf16
    %2 = vector.broadcast %cst : bf16 to vector<10x1x128xbf16>
    %c0_3 = arith.constant 0 : index
    %c0_4 = arith.constant 0 : index
    %c128 = arith.constant 128 : index
    %3 = vector.load %arg5[%c0_3, %c0_4, %c128] : memref<10x16x384xbf16, #tpu.memory_space<vmem>>, vector<10x16x128xbf16>
    tpu.vector_store %arg5[%c0_3, %c0_4, %c128], %1 {strides = array<i32>} : memref<10x16x384xbf16, #tpu.memory_space<vmem>>, vector<10x16x128xbf16>,
    %4 = vector.extract_strided_slice %1 {offsets = [0, 0, 0], sizes = [10, 15, 128], strides = [1, 1, 1]} : vector<10x16x128xbf16> to vector<10x15x128xbf16>
    %c0_5 = arith.constant 0 : index
    %c1 = arith.constant 1 : index
    %c0_6 = arith.constant 0 : index
    %5 = vector.load %arg5[%c0_5, %c1, %c0_6] : memref<10x16x384xbf16, #tpu.memory_space<vmem>>, vector<10x15x128xbf16>
    tpu.vector_store %arg5[%c0_5, %c1, %c0_6], %4 {strides = array<i32>} : memref<10x16x384xbf16, #tpu.memory_space<vmem>>, vector<10x15x128xbf16>,
    %c0_7 = arith.constant 0 : index
    %c0_8 = arith.constant 0 : index
    %c0_9 = arith.constant 0 : index
    %6 = vector.load %arg5[%c0_7, %c0_8, %c0_9] : memref<10x16x384xbf16, #tpu.memory_space<vmem>>, vector<10x1x128xbf16>
    tpu.vector_store %arg5[%c0_7, %c0_8, %c0_9], %2 {strides = array<i32>} : memref<10x16x384xbf16, #tpu.memory_space<vmem>>, vector<10x1x128xbf16>,
    %7 = vector.extract_strided_slice %1 {offsets = [0, 1, 0], sizes = [10, 15, 128], strides = [1, 1, 1]} : vector<10x16x128xbf16> to vector<10x15x128xbf16>
    %c0_10 = arith.constant 0 : index
    %c0_11 = arith.constant 0 : index
    %c256 = arith.constant 256 : index
    %8 = vector.load %arg5[%c0_10, %c0_11, %c256] : memref<10x16x384xbf16, #tpu.memory_space<vmem>>, vector<10x15x128xbf16>
    tpu.vector_store %arg5[%c0_10, %c0_11, %c256], %7 {strides = array<i32>} : memref<10x16x384xbf16, #tpu.memory_space<vmem>>, vector<10x15x128xbf16>,
    %c0_12 = arith.constant 0 : index
    %c15 = arith.constant 15 : index
    %c256_13 = arith.constant 256 : index
    %9 = vector.load %arg5[%c0_12, %c15, %c256_13] : memref<10x16x384xbf16, #tpu.memory_space<vmem>>, vector<10x1x128xbf16>
    tpu.vector_store %arg5[%c0_12, %c15, %c256_13], %2 {strides = array<i32>} : memref<10x16x384xbf16, #tpu.memory_space<vmem>>, vector<10x1x128xbf16>,
    %cst_14 = arith.constant 0.000000e+00 : f32
    %10 = vector.broadcast %cst_14 : f32 to vector<128x128xf32>
    %c0_15 = arith.constant 0 : index
    %c0_16 = arith.constant 0 : index
    %c0_17 = arith.constant 0 : index
    %11 = vector.load %arg5[%c0_15, %c0_16, %c0_17] : memref<10x16x384xbf16, #tpu.memory_space<vmem>>, vector<8x16x384xbf16>
    %12 = vector.shape_cast %11 : vector<8x16x384xbf16> to vector<128x384xbf16>
    %c0_18 = arith.constant 0 : index
    %c0_19 = arith.constant 0 : index
    %c0_20 = arith.constant 0 : index
    %13 = vector.load %arg2[%c0_18, %c0_19, %c0_20] : memref<3x384x128xbf16, #tpu.memory_space<vmem>>, vector<1x384x128xbf16>
    %14 = vector.shape_cast %13 : vector<1x384x128xbf16> to vector<384x128xbf16>
    %cst_21 = arith.constant dense<0.000000e+00> : vector<128x128xf32>
    %15 = tpu.matmul %12, %14, %cst_21 {dimension_numbers = #tpu.dot_dimension_numbers<[1], [0], [0], [1], [0, 0, 1, 1], [], []>} : vector<128x384xbf16>, vector<384x128xbf16>, vector<128x128xf32> -> vector<128x128xf32>
    %16 = arith.addf %10, %15 : vector<128x128xf32>
    %c1_22 = arith.constant 1 : index
    %c0_23 = arith.constant 0 : index
    %c0_24 = arith.constant 0 : index
    %17 = vector.load %arg5[%c1_22, %c0_23, %c0_24] : memref<10x16x384xbf16, #tpu.memory_space<vmem>>, vector<8x16x384xbf16>
    %18 = vector.shape_cast %17 : vector<8x16x384xbf16> to vector<128x384xbf16>
    %c1_25 = arith.constant 1 : index
    %c0_26 = arith.constant 0 : index
    %c0_27 = arith.constant 0 : index
    %19 = vector.load %arg2[%c1_25, %c0_26, %c0_27] : memref<3x384x128xbf16, #tpu.memory_space<vmem>>, vector<1x384x128xbf16>
    %20 = vector.shape_cast %19 : vector<1x384x128xbf16> to vector<384x128xbf16>
    %cst_28 = arith.constant dense<0.000000e+00> : vector<128x128xf32>
    %21 = tpu.matmul %18, %20, %cst_28 {dimension_numbers = #tpu.dot_dimension_numbers<[1], [0], [0], [1], [0, 0, 1, 1], [], []>} : vector<128x384xbf16>, vector<384x128xbf16>, vector<128x128xf32> -> vector<128x128xf32>
    %22 = arith.addf %16, %21 : vector<128x128xf32>
    %c2 = arith.constant 2 : index
    %c0_29 = arith.constant 0 : index
    %c0_30 = arith.constant 0 : index
    %23 = vector.load %arg5[%c2, %c0_29, %c0_30] : memref<10x16x384xbf16, #tpu.memory_space<vmem>>, vector<8x16x384xbf16>
    %24 = vector.shape_cast %23 : vector<8x16x384xbf16> to vector<128x384xbf16>
    %c2_31 = arith.constant 2 : index
    %c0_32 = arith.constant 0 : index
    %c0_33 = arith.constant 0 : index
    %25 = vector.load %arg2[%c2_31, %c0_32, %c0_33] : memref<3x384x128xbf16, #tpu.memory_space<vmem>>, vector<1x384x128xbf16>
    %26 = vector.shape_cast %25 : vector<1x384x128xbf16> to vector<384x128xbf16>
    %cst_34 = arith.constant dense<0.000000e+00> : vector<128x128xf32>
    %27 = tpu.matmul %24, %26, %cst_34 {dimension_numbers = #tpu.dot_dimension_numbers<[1], [0], [0], [1], [0, 0, 1, 1], [], []>} : vector<128x384xbf16>, vector<384x128xbf16>, vector<128x128xf32> -> vector<128x128xf32>
    %28 = arith.addf %22, %27 : vector<128x128xf32>
    %c0_35 = arith.constant 0 : index
    %c0_36 = arith.constant 0 : index
    %29 = vector.load %arg3[%c0_35, %c0_36] : memref<1x128xf32, #tpu.memory_space<vmem>>, vector<1x128xf32>
    %30 = vector.broadcast %29 : vector<1x128xf32> to vector<128x128xf32>
    %31 = arith.addf %28, %30 : vector<128x128xf32>
    %cst_37 = arith.constant 0.000000e+00 : f32
    %32 = vector.broadcast %cst_37 : f32 to vector<128x128xf32>
    %33 = arith.maximumf %31, %32 : vector<128x128xf32>
    %c1_38 = arith.constant 1 : index
    %c0_39 = arith.constant 0 : index
    %c128_40 = arith.constant 128 : index
    %34 = vector.load %arg5[%c1_38, %c0_39, %c128_40] : memref<10x16x384xbf16, #tpu.memory_space<vmem>>, vector<8x16x128xbf16>
    %35 = vector.shape_cast %34 : vector<8x16x128xbf16> to vector<128x128xbf16>
    %36 = arith.extf %35 : vector<128x128xbf16> to vector<128x128xf32>
    %37 = arith.addf %36, %33 : vector<128x128xf32>
    %38 = arith.truncf %37 : vector<128x128xf32> to vector<128x128xbf16>
    %39 = vector.shape_cast %38 : vector<128x128xbf16> to vector<1x8x16x128xbf16>
    %c0_41 = arith.constant 0 : index
    %c0_42 = arith.constant 0 : index
    %c0_43 = arith.constant 0 : index
    %c0_44 = arith.constant 0 : index
    %40 = vector.load %arg4[%c0_41, %c0_42, %c0_43, %c0_44] : memref<1x8x16x128xbf16, #tpu.memory_space<vmem>>, vector<1x8x16x128xbf16>
    tpu.vector_store %arg4[%c0_41, %c0_42, %c0_43, %c0_44], %39 {strides = array<i32>} : memref<1x8x16x128xbf16, #tpu.memory_space<vmem>>, vector<1x8x16x128xbf16>,
    return
  }
  func.func @transform_0(%arg0: i32) -> (i32, i32, i32, i32) {
    %c0_i32 = arith.constant 0 : i32
    %c0_i32_0 = arith.constant 0 : i32
    %c0_i32_1 = arith.constant 0 : i32
    %c0_i32_2 = arith.constant 0 : i32
    return %arg0, %c0_i32, %c0_i32_0, %c0_i32_1 : i32, i32, i32, i32
  }
  func.func @transform_1(%arg0: i32) -> (i32, i32, i32) {
    %c0_i32 = arith.constant 0 : i32
    %c0_i32_0 = arith.constant 0 : i32
    %c0_i32_1 = arith.constant 0 : i32
    %c0_i32_2 = arith.constant 0 : i32
    return %c0_i32, %c0_i32_0, %c0_i32_1 : i32, i32, i32
  }
  func.func @transform_2(%arg0: i32) -> (i32, i32) {
    %c0_i32 = arith.constant 0 : i32
    %c0_i32_0 = arith.constant 0 : i32
    %c0_i32_1 = arith.constant 0 : i32
    return %c0_i32, %c0_i32_0 : i32, i32
  }
  func.func @transform_3(%arg0: i32) -> (i32, i32, i32, i32) {
    %c0_i32 = arith.constant 0 : i32
    %c0_i32_0 = arith.constant 0 : i32
    %c0_i32_1 = arith.constant 0 : i32
    %c0_i32_2 = arith.constant 0 : i32
    return %arg0, %c0_i32, %c0_i32_0, %c0_i32_1 : i32, i32, i32, i32
  }
}

</mosaic_0001>

<bundles_post_ra>
// kernel: resblock_forward.1
= control target key start
LH: loop header
LB: loop body
LE: loop exit
PB: predicated region body
PF: predicated region fallthrough
CT: control target
= control target key end

     0   :  { %s2787_s12 = smov 0   ;;  %s3497_s0 = inlined_call_operand.vmem [shape: bf16[4,10,16,128], index: 0, kind: input, shape index: {}]   ;;  %s3498_s1 = inlined_call_operand.vmem [shape: bf16[3,384,128], index: 1, kind: input, shape index: {}]   ;;  %s3499_s2 = inlined_call_operand.vmem [shape: f32[1,128], index: 2, kind: input, shape index: {}]   ;;  %s3500_s3 = inlined_call_operand.vmem [shape: bf16[4,8,16,128], index: 3, kind: output, shape index: {}]  }
   0x1 LB: > { %s1967_s13 = sadd.s32 4294967295, %s2765_s12   ;;  %p1971_p0 = scmp.ge.s32.totalorder %s2765_s12, 1  ;;  %s2765_s12 = sphi %s2787_s12, %s13_s12  }
   0x2   : > { %p137_p1 = scmp.lt.s32.totalorder %s2765_s12, 5 }
   0x4   : > { %p138_p2 = pnand %p1971_p0, %p137_p1 }
   0x5   : > { %v2677_v0 = vld [vmem:[%s3498_s1 + $0x100] sm:$0xff] (!%p138_p2)   ;;  %v2680_v3 = vld [vmem:[%s3498_s1 + $0x108] sm:$0xff] (!%p138_p2)   ;;  %v2683_v6 = vld [vmem:[%s3498_s1 + $0x110] sm:$0xff] (!%p138_p2)   ;;  %p161_p3 = scmp.lt.s32.totalorder (!%p138_p2), %s1967_s13, 3  ;;  %vm342_vm0 = vcmask (!%p138_p2), 1047552   ;;  %vm470_vm6 = vcmask (!%p138_p2), 1047559  }
   0x6   : > { %141 = sbr.rel (%p138_p2) target bundleno = 409 (0x199), region = 32  ;;  %v2678_v1 = vld [vmem:[%s3498_s1 + $0x140] sm:$0xff] (!%p138_p2)   ;;  %2236 = vmatprep.subr.bf16.mxu0 (!%p138_p2), %v2677_v0  ;;  %v2681_v4 = vld [vmem:[%s3498_s1 + $0x148] sm:$0xff] (!%p138_p2)   ;;  %v2684_v7 = vld [vmem:[%s3498_s1 + $0x150] sm:$0xff] (!%p138_p2)   ;;  %vm438_vm1 = vsmask.f32 (!%p138_p2), 7424 }
   0x7   : > { %v2679_v2 = vld [vmem:[%s3498_s1 + $0xc0] sm:$0xff] (!%p138_p2)   ;;  %2476 = vmatprep.subr.bf16.mxu1 (!%p138_p2), %v2678_v1  ;;  %v2682_v5 = vld [vmem:[%s3498_s1 + $0xc8] sm:$0xff] (!%p138_p2)   ;;  %v2685_v8 = vld [vmem:[%s3498_s1 + $0xd0] sm:$0xff] (!%p138_p2)   ;;  %vm343_vm2 = vsmask.f32 (!%p138_p2), 7938  ;;  %vm375_vm7 = vcmask (!%p138_p2), 1040384  }
   0x8   : > { %2237 = vmatpush3.bf16.msra.mxu0 (!%p138_p2), %v2679_v2  ;;  %2477 = vmatpush3.bf16.msra.mxu1 (!%p138_p2), %v2678_v1  ;;  %v2686_v9 = vld [vmem:[%s3498_s1 + $0x118] sm:$0xff] (!%p138_p2)   ;;  %v2689_v12 = vld [vmem:[%s3498_s1 + $0x120] sm:$0xff] (!%p138_p2)   ;;  %v2692_v15 = vld [vmem:[%s3498_s1 + $0x128] sm:$0xff] (!%p138_p2)   ;;  %vm471_vm4 = vsmask.f32 (!%p138_p2), 7966 }
   0x9   : > { %2238 = vmatprep.subr.bf16.mxu0 (!%p138_p2), %v2680_v3  ;;  %2478 = vmatprep.subr.bf16.mxu1 (!%p138_p2), %v2681_v4  ;;  %v2687_v10 = vld [vmem:[%s3498_s1 + $0x158] sm:$0xff] (!%p138_p2)   ;;  %v2690_v13 = vld [vmem:[%s3498_s1 + $0x160] sm:$0xff] (!%p138_p2)   ;;  %v2693_v16 = vld [vmem:[%s3498_s1 + $0x168] sm:$0xff] (!%p138_p2)   ;;  %vm376_vm8 = vsmask.f32 (!%p138_p2), 256 }
   0xa   : > { %v2688_v11 = vld [vmem:[%s3498_s1 + $0xd8] sm:$0xff] (!%p138_p2)   ;;  %v2691_v14 = vld [vmem:[%s3498_s1 + $0xe0] sm:$0xff] (!%p138_p2)   ;;  %v2694_v17 = vld [vmem:[%s3498_s1 + $0xe8] sm:$0xff] (!%p138_p2)  }
   0xb   : > { %v2695_v18 = vld [vmem:[%s3498_s1 + $0x130] sm:$0xff] (!%p138_p2)   ;;  %v2698_v22 = vld [vmem:[%s3498_s1 + $0x138] sm:$0xff] (!%p138_p2)   ;;  %v443_v27 = vld [vmem:[#allocation2 + $0x28] sm:$0xff] (!%p138_p2) }
   0xc   : > { %2239 = vmatpush3.bf16.msra.mxu0 (!%p138_p2), %v2682_v5  ;;  %2479 = vmatpush3.bf16.msra.mxu1 (!%p138_p2), %v2681_v4  ;;  %v2696_v19 = vld [vmem:[%s3498_s1 + $0x170] sm:$0xff] (!%p138_p2)   ;;  %v2699_v23 = vld [vmem:[%s3498_s1 + $0x178] sm:$0xff] (!%p138_p2)   ;;  %vm2887_vm3 = vmand (!%p138_p2), %vm342_vm0, %vm438_vm1 }
   0xd   : > { %2240 = vmatprep.subr.bf16.mxu0 %v2683_v6  ;;  %2480 = vmatprep.subr.bf16.mxu1 %v2684_v7  ;;  %s3510_s13 = smov (!%p161_p3, %s1967_s13), 3  ;;  %v2697_v20 = vld [vmem:[%s3498_s1 + $0xf0] sm:$0xff]   ;;  %v2700_v24 = vld [vmem:[%s3498_s1 + $0xf8] sm:$0xff]   ;;  %vm2895_vm5 = vmand %vm342_vm0, %vm343_vm2 }
   0xe   : > { %s2668_s23 = smul.u32 80, %s3510_s13  ;;  %v348_v31 = vld [vmem:[#allocation2 + $0x18] sm:$0xff]  ;;  %v2703_v38 = vld [vmem:[%s3498_s1 + $0x40] sm:$0xff]   ;;  %vm2913_vm9 = vmand %vm470_vm6, %vm471_vm4  ;;  %s2172_s17 = sshll.u32 %s3510_s13, 6 }
   0xf   : > { %v2704_v39 = vld [vmem:[%s3498_s1 + $0x1c0] sm:$0xff]   ;;  %v351_v50 = vld [vmem:[#allocation2 + $0x30] sm:$0xff]  ;;  %vm2927_vm10 = vmand %vm375_vm7, %vm376_vm8  ;;  %s3450_s19 = scalar_lea.vmem %s3500_s3, %s2172_s17 }
  0x10   : > { %2241 = vmatpush3.bf16.msra.mxu0 %v2685_v8  ;;  %2481 = vmatpush3.bf16.msra.mxu1 %v2684_v7  ;;  %s2865_s5 = scalar_lea.vmem %s3497_s0, %s2668_s23  ;;  %v446_v43 = vld [vmem:[#allocation2 + $0x40] sm:$0xff]  ;;  %v449_v61 = vld [vmem:[#allocation2 + $0x58] sm:$0xff]  ;;  %v452_v1 = vld [vmem:[#allocation2 + $0x70] sm:$0xff] }
  0x11   : > { %2242 = vmatprep.subr.bf16.mxu0 %v2686_v9  ;;  %2482 = vmatprep.subr.bf16.mxu1 %v2687_v10  ;;  %v2871_v21 = vld [vmem:[%s2865_s5 + $0x8] sm:$0xff]   ;;  %v2892_v32 = vld [vmem:[%s2865_s5 + $0x10] sm:$0xff]   ;;  %v2920_v49 = vld [vmem:[%s2865_s5 + $0x18] sm:$0xff]  }
  0x12   : > { %253 = vst [vmem:[#allocation2 + $0x20] sm:$0xff] %v2871_v21  ;;  %v273_v25 = vshll.u32 %v2871_v21, 16  ;;  %825 = vmatprep.mubr.bf16.mxu0 %v2871_v21  ;;  %v270_v26 = vshrl.u32 %v2871_v21, 16  ;;  %v277_v36 = vshrl.u32 %v2892_v32, 16  ;;  %v280_v37 = vshll.u32 %v2892_v32, 16  ;;  %254 = vst [vmem:[#allocation2 + $0x38] sm:$0xff] %v2892_v32 }
  0x13   : > { %v2925_v52 = vld [vmem:[%s2865_s5 + $0x20] sm:$0xff]   ;;  %v284_v54 = vshrl.u32 %v2920_v49, 16  ;;  %v287_v55 = vshll.u32 %v2920_v49, 16  ;;  %255 = vst [vmem:[#allocation2 + $0x50] sm:$0xff] %v2920_v49  ;;  %v2750_v29 = vld [vmem:[%s3498_s1 + $0xb0] sm:$0xff]   ;;  %v2753_v53 = vld [vmem:[%s3498_s1 + $0x218] sm:$0xff]  }
  0x14   : > { %2243 = vmatpush3.bf16.msra.mxu0 %v2688_v11  ;;  %2483 = vmatpush3.bf16.msra.mxu1 %v2687_v10  ;;  %v410_v28 = vrot.slane %v273_v25, 1  ;;  %v272_v30 = vrot.slane %v270_v26, 7  ;;  %v412_v42 = vrot.slane %v280_v37, 1  ;;  %v279_v44 = vrot.slane %v277_v36, 7  ;;  %256 = vst [vmem:[#allocation2 + $0x68] sm:$0xff] %v2925_v52  ;;  %v2706_v8 = vld [vmem:[%s3498_s1 + $0x180] sm:$0xff]  }
  0x15   : > { %2244 = vmatprep.subr.bf16.mxu0 %v2689_v12  ;;  %2484 = vmatprep.subr.bf16.mxu1 %v2690_v13  ;;  %v291_v56 = vshrl.u32 %v2925_v52, 16  ;;  %v294_v57 = vshll.u32 %v2925_v52, 16  ;;  %v414_v60 = vrot.slane %v287_v55, 1  ;;  %v286_v4 = vrot.slane %v284_v54, 7  ;;  %v2751_v47 = vld [vmem:[%s3498_s1 + $0x210] sm:$0xff]  }
  0x16   : > { %v411_v34 = vor.u32 %v410_v28, %v270_v26  ;;  %v275_v35 = vor.u32 %v273_v25, %v272_v30  ;;  %v413_v45 = vor.u32 %v412_v42, %v277_v36  ;;  %v282_v46 = vor.u32 %v280_v37, %v279_v44  ;;  %v2707_v25 = vld [vmem:[%s3498_s1 + $0x48] sm:$0xff]  }
  0x17   : > { %v416_v0 = vrot.slane %v294_v57, 1  ;;  %v415_v2 = vor.u32 %v414_v60, %v284_v54  ;;  %v289_v11 = vor.u32 %v287_v55, %v286_v4  ;;  %v455_v28 = vld [vmem:[#allocation2 + $0x88] sm:$0xff]  ;;  %v2715_v60 = vld [vmem:[%s3498_s1 + $0x58] sm:$0xff]  }
  0x18   : > { %2245 = vmatpush3.bf16.msra.mxu0 %v2691_v14  ;;  %2485 = vmatpush3.bf16.msra.mxu1 %v2690_v13  ;;  %v444_v40 = vsel %vm2887_vm3, %v411_v34, %v443_v27  ;;  %v349_v41 = vsel %vm2895_vm5, %v275_v35, %v348_v31  ;;  %v447_v48 = vsel %vm2887_vm3, %v413_v45, %v446_v43  ;;  %v2955_v13 = vld [vmem:[%s2865_s5 + $0x28] sm:$0xff]   ;;  %v293_v27 = vrot.slane %v291_v56, 7  ;;  %v2720_v34 = vld [vmem:[%s3498_s1 + $0x1d0] sm:$0xff]   ;;  %v458_v45 = vld [vmem:[#allocation2 + $0xa0] sm:$0xff] }
  0x19   : > { %2246 = vmatprep.subr.bf16.mxu0 %v2692_v15  ;;  %2486 = vmatprep.subr.bf16.mxu1 %v2693_v16  ;;  %445 = vst [vmem:[#allocation2 + $0x28] sm:$0xff] %v444_v40  ;;  %350 = vst [vmem:[#allocation2 + $0x18] sm:$0xff] %v349_v41  ;;  %v352_v51 = vsel %vm2895_vm5, %v282_v46, %v351_v50  ;;  %v417_v3 = vor.u32 %v416_v0, %v291_v56  ;;  %v2712_v14 = vld [vmem:[%s3498_s1 + $0x1c8] sm:$0xff]   ;;  %v2711_v43 = vld [vmem:[%s3498_s1 + $0x50] sm:$0xff]  }
  0x1a   : > { %448 = vst [vmem:[#allocation2 + $0x40] sm:$0xff] %v447_v48  ;;  %353 = vst [vmem:[#allocation2 + $0x30] sm:$0xff] %v352_v51  ;;  %v450_v6 = vsel %vm2887_vm3, %v415_v2, %v449_v61  ;;  %v354_v15 = vld [vmem:[#allocation2 + $0x48] sm:$0xff]  ;;  %v2722_v51 = vld [vmem:[%s3498_s1 + $0x190] sm:$0xff]   ;;  %v296_v54 = vor.u32 %v294_v57, %v293_v27 }
  0x1b   : > { %451 = vst [vmem:[#allocation2 + $0x58] sm:$0xff] %v450_v6  ;;  %v453_v10 = vsel %vm2887_vm3, %v417_v3, %v452_v1  ;;  %257 = vst [vmem:[#allocation2 + $0x80] sm:$0xff] %v2955_v13  ;;  %v357_v57 = vld [vmem:[#allocation2 + $0x60] sm:$0xff]  ;;  %v2716_v4 = vld [vmem:[%s3498_s1 + $0x18] sm:$0xff]  }
  0x1c   : > { %2247 = vmatpush3.bf16.msra.mxu0 %v2694_v17  ;;  %2487 = vmatpush3.bf16.msra.mxu1 %v2693_v16  ;;  %454 = vst [vmem:[#allocation2 + $0x70] sm:$0xff] %v453_v10  ;;  %v298_v16 = vshrl.u32 %v2955_v13, 16  ;;  %v301_v17 = vshll.u32 %v2955_v13, 16  ;;  %v3041_v0 = vld [vmem:[%s2865_s5 + $0x40] sm:$0xff]   ;;  %v2730_v27 = vld [vmem:[%s3498_s1 + $0x198] sm:$0xff]  }
  0x1d   : > { %2248 = vmatprep.subr.bf16.mxu0 %v2695_v18  ;;  %2488 = vmatprep.subr.bf16.mxu1 %v2696_v19  ;;  %v355_v18 = vsel %vm2895_vm5, %v289_v11, %v354_v15  ;;  %260 = vst [vmem:[#allocation2 + $0xc8] sm:$0xff] %v3041_v0  ;;  %v2719_v10 = vld [vmem:[%s3498_s1 + $0x60] sm:$0xff]   ;;  %v461_v11 = vld [vmem:[#allocation2 + $0xb8] sm:$0xff] }
  0x1e   : > { %356 = vst [vmem:[#allocation2 + $0x48] sm:$0xff] %v355_v18  ;;  %v418_v26 = vrot.slane %v301_v17, 1  ;;  %v300_v2 = vrot.slane %v298_v16, 7  ;;  %v2728_v15 = vld [vmem:[%s3498_s1 + $0x1d8] sm:$0xff]  }
  0x20   : > { %2249 = vmatpush3.bf16.msra.mxu0 %v2697_v20  ;;  %2489 = vmatpush3.bf16.msra.mxu1 %v2696_v19  ;;  %v476_v58 = vld [vmem:[#allocation2 + $0x28] sm:$0x80]  ;;  %v381_v59 = vld [vmem:[#allocation2 + $0x18] sm:$0x1]  ;;  %v419_v36 = vor.u32 %v418_v26, %v298_v16 }
  0x21   : > { %2250 = vmatprep.subr.bf16.mxu0 %v2698_v22  ;;  %2490 = vmatprep.subr.bf16.mxu1 %v2699_v23  ;;  %v477_v62 = vsel %vm2913_vm9, 0, %v476_v58  ;;  %v382_v63 = vsel %vm2927_vm10, 0, %v381_v59  ;;  %v479_v5 = vld [vmem:[#allocation2 + $0x40] sm:$0x80]  ;;  %v384_v9 = vld [vmem:[#allocation2 + $0x30] sm:$0x1] }
  0x22   : > { %478 = vst [vmem:[#allocation2 + $0x28] sm:$0x80] %v477_v62  ;;  %383 = vst [vmem:[#allocation2 + $0x18] sm:$0x1] %v382_v63  ;;  %v480_v7 = vsel %vm2913_vm9, 0, %v479_v5  ;;  %v385_v12 = vsel %vm2927_vm10, 0, %v384_v9  ;;  %v456_v44 = vsel %vm2887_vm3, %v419_v36, %v455_v28  ;;  %v358_v63 = vsel %vm2895_vm5, %v296_v54, %v357_v57 }
  0x23   : > { %481 = vst [vmem:[#allocation2 + $0x40] sm:$0x80] %v480_v7  ;;  %386 = vst [vmem:[#allocation2 + $0x30] sm:$0x1] %v385_v12  ;;  %v2705_v22 = vld [vmem:[%s3498_s1] sm:$0xff]   ;;  %v3026_v58 = vld [vmem:[%s2865_s5 + $0x38] sm:$0xff]  }
  0x24   : > { %2251 = vmatpush3.bf16.msra.mxu0 %v2700_v24  ;;  %2491 = vmatpush3.bf16.msra.mxu1 %v2699_v23  ;;  %v2714_v23 = vld [vmem:[%s3498_s1 + $0x188] sm:$0xff]   ;;  %v2976_v24 = vld [vmem:[%s2865_s5 + $0x30] sm:$0xff]   ;;  %v482_v35 = vld [vmem:[#allocation2 + $0x58] sm:$0x80]  ;;  %457 = vst [vmem:[#allocation2 + $0x88] sm:$0xff] %v456_v44  ;;  %v312_v61 = vshrl.u32 %v3026_v58, 16 }
  0x25   : > { %2316 = vmatprep.subr.bf16.mxu1 %v2703_v38  ;;  %2396 = vmatprep.subr.bf16.mxu0 %v2704_v39  ;;  %v305_v30 = vshrl.u32 %v2976_v24, 16  ;;  %v308_v31 = vshll.u32 %v2976_v24, 16  ;;  %258 = vst [vmem:[#allocation2 + $0x98] sm:$0xff] %v2976_v24  ;;  %v2708_v38 = vld [vmem:[%s3498_s1 + $0x8] sm:$0xff]   ;;  %v483_v39 = vsel %vm2913_vm9, 0, %v482_v35  ;;  %v2713_v59 = vld [vmem:[%s3498_s1 + $0x10] sm:$0xff]  }
  0x26   : > { %v485_v40 = vld [vmem:[#allocation2 + $0x70] sm:$0x80]  ;;  %484 = vst [vmem:[#allocation2 + $0x58] sm:$0x80] %v483_v39  ;;  %v387_v50 = vld [vmem:[#allocation2 + $0x48] sm:$0x1] }
  0x27   : > { %v420_v41 = vrot.slane %v308_v31, 1  ;;  %v486_v42 = vsel %vm2913_vm9, 0, %v485_v40  ;;  %v388_v55 = vsel %vm2927_vm10, 0, %v387_v50  ;;  %v315_v62 = vshll.u32 %v3026_v58, 16  ;;  %259 = vst [vmem:[#allocation2 + $0xb0] sm:$0xff] %v3026_v58  ;;  %359 = vst [vmem:[#allocation2 + $0x60] sm:$0xff] %v358_v63 }
  0x28   : > { %487 = vst [vmem:[#allocation2 + $0x70] sm:$0x80] %v486_v42  ;;  %389 = vst [vmem:[#allocation2 + $0x48] sm:$0x1] %v388_v55  ;;  %v319_v7 = vshrl.u32 %v3041_v0, 16  ;;  %v2721_v28 = vld [vmem:[%s3498_s1 + $0x20] sm:$0xff]  }
  0x29   : > { %v2965_v19 = vld [vmem:[#allocation2 + $0x28] sm:$0xff]  ;;  %v2967_v20 = vld [vmem:[#allocation2 + $0x18] sm:$0xff]  ;;  %v421_v48 = vor.u32 %v420_v41, %v305_v30  ;;  %v422_v6 = vrot.slane %v315_v62, 1  ;;  %v307_v35 = vrot.slane %v305_v30, 7  ;;  %v3100_v30 = vld [vmem:[%s2865_s5] sm:$0xff]   ;;  %v314_v54 = vrot.slane %v312_v61, 7 }
  0x2a   : > { %2492 = vmatprep.mubr.bf16.mxu1 %v2965_v19  ;;  %826 = vmatmul.mubr.bf16.vlgmr.msra.gmra.mrb[0].mxu0 %v2967_v20  ;;  %v2994_v37 = vld [vmem:[#allocation2 + $0x40] sm:$0xff]  ;;  %v3011_v46 = vld [vmem:[#allocation2 + $0x30] sm:$0xff]  ;;  %v2723_v39 = vld [vmem:[%s3498_s1 + $0x68] sm:$0xff]   ;;  %v321_v63 = vrot.slane %v319_v7, 7 }
  0x2b   : > { %2397 = vmatpush3.bf16.msra.mxu0 %v2706_v8  ;;  %833 = vmatprep.mubr.bf16.mxu0 %v2892_v32  ;;  %v459_v56 = vsel %vm2887_vm3, %v421_v48, %v458_v45  ;;  %v488_v5 = vld [vmem:[#allocation2 + $0x88] sm:$0x80]  ;;  %v322_v8 = vshll.u32 %v3041_v0, 16  ;;  %v423_v12 = vor.u32 %v422_v6, %v312_v61  ;;  %v360_v41 = vld [vmem:[#allocation2 + $0x78] sm:$0xff]  ;;  %v263_v45 = vshrl.u32 %v3100_v30, 16  ;;  %v2735_v50 = vld [vmem:[%s3498_s1 + $0x1e0] sm:$0xff]  }
  0x2c   : > { %2398 = vmatprep.subr.bf16.mxu0 %v2712_v14  ;;  %2493 = vmatmul.mubr.bf16.vlgmr.msra.gmra.mrb[0].mxu1 %v2994_v37  ;;  %460 = vst [vmem:[#allocation2 + $0xa0] sm:$0xff] %v459_v56  ;;  %v489_v9 = vsel %vm2913_vm9, 0, %v488_v5  ;;  %v266_v48 = vshll.u32 %v3100_v30, 16  ;;  %v345_v55 = vld [vmem:[#allocation2] sm:$0xff]  ;;  %v2729_v57 = vld [vmem:[%s3498_s1 + $0x30] sm:$0xff]   ;;  %v2731_v5 = vld [vmem:[%s3498_s1 + $0x78] sm:$0xff]  }
  0x2d   : > { %2317 = vmatpush3.bf16.msra.mxu1 %v2705_v22  ;;  %v3043_v1 = vld [vmem:[#allocation2 + $0x58] sm:$0xff]  ;;  %490 = vst [vmem:[#allocation2 + $0x88] sm:$0x80] %v489_v9  ;;  %v424_v14 = vrot.slane %v322_v8, 1  ;;  %v464_v22 = vld [vmem:[#allocation2 + $0xd0] sm:$0xff]  ;;  %v317_v9 = vor.u32 %v315_v62, %v314_v54 }
  0x2e   : > { %2318 = vmatprep.subr.bf16.mxu1 %v2707_v25  ;;  %2496 = vmatprep.mubr.bf16.mxu1 %v3043_v1  ;;  %v462_v25 = vsel %vm2887_vm3, %v423_v12, %v461_v11  ;;  %v390_v36 = vld [vmem:[#allocation2 + $0x60] sm:$0x1]  ;;  %v2738_v12 = vld [vmem:[%s3498_s1 + $0x1e8] sm:$0xff]  }
  0x2f   : > { %2399 = vmatpush3.bf16.msra.mxu0 %v2714_v23  ;;  %v3048_v3 = vld [vmem:[#allocation2 + $0x70] sm:$0xff]  ;;  %v3071_v16 = vld [vmem:[#allocation2 + $0x48] sm:$0xff]  ;;  %v425_v26 = vor.u32 %v424_v14, %v319_v7  ;;  %463 = vst [vmem:[#allocation2 + $0xb8] sm:$0xff] %v462_v25  ;;  %v391_v40 = vsel %vm2927_vm10, 0, %v390_v36  ;;  %v2732_v14 = vld [vmem:[%s3498_s1 + $0x38] sm:$0xff]  }
  0x30   : > { %2400 = vmatprep.subr.bf16.mxu0 %v2720_v34  ;;  %v303_v34 = vor.u32 %v301_v17, %v300_v2  ;;  %v2724_v17 = vld [vmem:[%s3498_s1 + $0x28] sm:$0xff]   ;;  %392 = vst [vmem:[#allocation2 + $0x60] sm:$0x1] %v391_v40  ;;  %v363_v2 = vld [vmem:[#allocation2 + $0x90] sm:$0xff] }
  0x31   : > { %2319 = vmatpush3.bf16.msra.mxu1 %v2708_v38  ;;  %v465_v38 = vsel %vm2887_vm3, %v425_v26, %v464_v22  ;;  %v366_v22 = vld [vmem:[#allocation2 + $0xa8] sm:$0xff]  ;;  %v2734_v26 = vld [vmem:[%s3498_s1 + $0x80] sm:$0xff]  }
  0x32   : > { %834 = vmatmul.mubr.bf16.gmra.mrb[4].mxu0 %v3011_v46  ;;  %2320 = vmatprep.subr.bf16.mxu1 %v2711_v43  ;;  %466 = vst [vmem:[#allocation2 + $0xd0] sm:$0xff] %v465_v38  ;;  %v2727_v43 = vld [vmem:[%s3498_s1 + $0x70] sm:$0xff]   ;;  %v361_v44 = vsel %vm2895_vm5, %v303_v34, %v360_v41  ;;  %v369_v34 = vld [vmem:[#allocation2 + $0xc0] sm:$0xff] }
  0x33   : > { %841 = vmatprep.mubr.bf16.mxu0 %v2920_v49  ;;  %2401 = vmatpush3.bf16.msra.mxu0 %v2722_v51  ;;  %v491_v18 = vld [vmem:[#allocation2 + $0xa0] sm:$0x80]  ;;  %362 = vst [vmem:[#allocation2 + $0x78] sm:$0xff] %v361_v44  ;;  %v310_v51 = vor.u32 %v308_v31, %v307_v35  ;;  %v2745_v44 = vld [vmem:[%s3498_s1 + $0x1b8] sm:$0xff]  }
  0x34   : > { %2497 = vmatmul.mubr.bf16.gmra.mrb[4].mxu1 %v3048_v3  ;;  %v492_v23 = vsel %vm2913_vm9, 0, %v491_v18  ;;  %2402 = vmatprep.subr.bf16.mxu0 %v2728_v15  ;;  %v3102_v42 = vld [vmem:[#allocation2 + $0x88] sm:$0xff]  ;;  %v2736_v31 = vld [vmem:[%s3498_s1 + $0x1a0] sm:$0xff]  }
  0x35   : > { %2321 = vmatpush3.bf16.msra.mxu1 %v2713_v59  ;;  %493 = vst [vmem:[#allocation2 + $0xa0] sm:$0x80] %v492_v23  ;;  %2500 = vmatprep.mubr.bf16.mxu1 %v3102_v42  ;;  %v364_v7 = vsel %vm2895_vm5, %v310_v51, %v363_v2  ;;  %v2739_v15 = vld [vmem:[%s3498_s1 + $0x1a8] sm:$0xff]   ;;  %v324_v23 = vor.u32 %v322_v8, %v321_v63  ;;  %v2742_v8 = vld [vmem:[%s3498_s1 + $0x1b0] sm:$0xff]  }
  0x36   : > { %2322 = vmatprep.subr.bf16.mxu1 %v2715_v60  ;;  %v494_v59 = vld [vmem:[#allocation2 + $0xb8] sm:$0x80]  ;;  %v265_v60 = vrot.slane %v263_v45, 7  ;;  %365 = vst [vmem:[#allocation2 + $0x90] sm:$0xff] %v364_v7 }
  0x37   : > { %2403 = vmatpush3.bf16.msra.mxu0 %v2730_v27  ;;  %v495_v61 = vsel %vm2913_vm9, 0, %v494_v59  ;;  %v367_v27 = vsel %vm2895_vm5, %v317_v9, %v366_v22  ;;  %v370_v36 = vsel %vm2895_vm5, %v324_v23, %v369_v34  ;;  %v408_v59 = vrot.slane %v266_v48, 1  ;;  %v2746_v9 = vld [vmem:[%s3498_s1 + $0xa0] sm:$0xff]  }
  0x38   : > { %2404 = vmatprep.subr.bf16.mxu0 %v2735_v50  ;;  %496 = vst [vmem:[#allocation2 + $0xb8] sm:$0x80] %v495_v61  ;;  %v268_v6 = vor.u32 %v266_v48, %v265_v60  ;;  %368 = vst [vmem:[#allocation2 + $0xa8] sm:$0xff] %v367_v27  ;;  %v440_v48 = vld [vmem:[#allocation2 + $0x10] sm:$0xff] }
  0x39   : > { %2323 = vmatpush3.bf16.msra.mxu1 %v2716_v4  ;;  %v497_v4 = vld [vmem:[#allocation2 + $0xd0] sm:$0x80]  ;;  %371 = vst [vmem:[#allocation2 + $0xc0] sm:$0xff] %v370_v36  ;;  %v409_v63 = vor.u32 %v408_v59, %v263_v45 }
  0x3a   : > { %842 = vmatmul.mubr.bf16.gmra.mrb[8].mxu0 %v3071_v16  ;;  %2324 = vmatprep.subr.bf16.mxu1 %v2719_v10  ;;  %v3141_v10 = vld [vmem:[#allocation2 + $0x60] sm:$0xff]  ;;  %v498_v11 = vsel %vm2913_vm9, 0, %v497_v4  ;;  %v346_v62 = vsel %vm2895_vm5, %v268_v6, %v345_v55  ;;  %v393_v18 = vld [vmem:[#allocation2 + $0x78] sm:$0x1]  ;;  %v2740_v4 = vld [vmem:[%s3498_s1 + $0x90] sm:$0xff]  }
  0x3b   : > { %849 = vmatprep.mubr.bf16.mxu0 %v2925_v52  ;;  %2405 = vmatpush3.bf16.msra.mxu0 %v2736_v31  ;;  %499 = vst [vmem:[#allocation2 + $0xd0] sm:$0x80] %v498_v11  ;;  %347 = vst [vmem:[#allocation2] sm:$0xff] %v346_v62  ;;  %v394_v25 = vsel %vm2927_vm10, 0, %v393_v18  ;;  %v3200_v55 = vld [vmem:[%s3498_s1 + $0x200] sm:$0xff]   ;;  %v2737_v31 = vld [vmem:[%s3498_s1 + $0x88] sm:$0xff]  }
  0x3c   : > { %v3119_v56 = vld [vmem:[#allocation2 + $0xa0] sm:$0xff]  ;;  %2406 = vmatprep.subr.bf16.mxu0 %v2738_v12  ;;  %395 = vst [vmem:[#allocation2 + $0x78] sm:$0x1] %v394_v25  ;;  %v372_v62 = vld [vmem:[#allocation2 + $0xd8] sm:$0xff] }
  0x3d   : > { %2325 = vmatpush3.bf16.msra.mxu1 %v2721_v28  ;;  %v2741_v28 = vld [vmem:[%s3498_s1 + $0x1f0] sm:$0xff]  }
  0x3e   : > { %2326 = vmatprep.subr.bf16.mxu1 %v2723_v39  ;;  %2501 = vmatmul.mubr.bf16.gmra.mrb[8].mxu1 %v3119_v56  ;;  %v396_v38 = vld [vmem:[#allocation2 + $0x90] sm:$0x1] }
  0x3f   : > { %2407 = vmatpush3.bf16.msra.mxu0 %v2739_v15  ;;  %v3173_v35 = vld [vmem:[#allocation2 + $0xb8] sm:$0xff]  ;;  %v397_v40 = vsel %vm2927_vm10, 0, %v396_v38  ;;  %v399_v51 = vld [vmem:[#allocation2 + $0xa8] sm:$0x1] }
  0x40   : > { %2408 = vmatprep.subr.bf16.mxu0 %v2741_v28  ;;  %2504 = vmatprep.mubr.bf16.mxu1 %v3173_v35  ;;  %398 = vst [vmem:[#allocation2 + $0x90] sm:$0x1] %v397_v40  ;;  %v400_v54 = vsel %vm2927_vm10, 0, %v399_v51  ;;  %v467_v15 = vld [vmem:[#allocation2 + $0xe8] sm:$0xff] }
  0x41   : > { %2327 = vmatpush3.bf16.msra.mxu1 %v2724_v17  ;;  %v2744_v17 = vld [vmem:[%s3498_s1 + $0x1f8] sm:$0xff]   ;;  %401 = vst [vmem:[#allocation2 + $0xa8] sm:$0x1] %v400_v54 }
  0x42   : > { %2328 = vmatprep.subr.bf16.mxu1 %v2727_v43  ;;  %850 = vmatmul.mubr.bf16.gmra.mrb[12].mxu0 %v3141_v10  ;;  %v3178_v39 = vld [vmem:[#allocation2 + $0xd0] sm:$0xff]  ;;  %v378_v41 = vld [vmem:[#allocation2] sm:$0x1] }
  0x43   : > { %857 = vmatprep.mubr.bf16.mxu0 %v2955_v13  ;;  %2409 = vmatpush3.bf16.msra.mxu0 %v2742_v8  ;;  %v379_v43 = vsel %vm2927_vm10, 0, %v378_v41  ;;  %v3192_v50 = vld [vmem:[#allocation2 + $0x78] sm:$0xff] }
  0x44   : > { %2410 = vmatprep.subr.bf16.mxu0 %v2744_v17  ;;  %380 = vst [vmem:[#allocation2] sm:$0x1] %v379_v43  ;;  %v2752_v8 = vld [vmem:[%s3498_s1 + $0xb8] sm:$0xff]  }
  0x45   : > { %2329 = vmatpush3.bf16.msra.mxu1 %v2729_v57  ;;  %v402_v57 = vld [vmem:[#allocation2 + $0xc0] sm:$0x1] }
  0x46   : > { %2330 = vmatprep.subr.bf16.mxu1 %v2731_v5  ;;  %2505 = vmatmul.mubr.bf16.gmra.mrb[12].mxu1 %v3178_v39  ;;  %v403_v60 = vsel %vm2927_vm10, 0, %v402_v57  ;;  %v441_v5 = vsel %vm2887_vm3, %v409_v63, %v440_v48 }
  0x47   : > { %1163 = vmatprep.mubr.bf16.mxu1 %v3100_v30  ;;  %2411 = vmatpush3.bf16.msra.mxu0 %v2745_v44  ;;  %404 = vst [vmem:[#allocation2 + $0xc0] sm:$0x1] %v403_v60  ;;  %v3213_v2 = vld [vmem:[#allocation2 + $0x90] sm:$0xff]  ;;  %442 = vst [vmem:[#allocation2 + $0x10] sm:$0xff] %v441_v5  ;;  %v3224_v30 = vld [vmem:[%s2865_s5 + $0x48] sm:$0xff]  }
  0x48   : > { %2540 = vmatprep.subr.bf16.mxu0 %v3200_v55  ;;  %v3229_v45 = vld [vmem:[#allocation2 + $0xa8] sm:$0xff]  ;;  %v326_v6 = vshrl.u32 %v3224_v30, 16  ;;  %v329_v7 = vshll.u32 %v3224_v30, 16 }
  0x49   : > { %2331 = vmatpush3.bf16.msra.mxu1 %v2732_v14 }
  0x4a   : > { %2508 = vmatprep.subr.bf16.mxu1 %v2734_v26  ;;  %858 = vmatmul.mubr.bf16.gmra.mrb[16].mxu0 %v3192_v50  ;;  %v328_v11 = vrot.slane %v326_v6, 7  ;;  %v426_v12 = vrot.slane %v329_v7, 1 }
  0x4b   : > { %865 = vmatprep.mubr.bf16.mxu0 %v2976_v24  ;;  %v503_v61 = vld [vmem:[#allocation2] sm:$0xff] }
  0x4c   : > { %v331_v18 = vor.u32 %v329_v7, %v328_v11  ;;  %v427_v22 = vor.u32 %v426_v12, %v326_v6 }
  0x4e   : > { %1164 = vmatmul.mubr.bf16.vlgmr.msra.gmra.mrb[16].mxu1 %v503_v61  ;;  %v473_v14 = vld [vmem:[#allocation2 + $0x10] sm:$0x80]  ;;  %v373_v23 = vsel %vm2895_vm5, %v331_v18, %v372_v62  ;;  %v468_v25 = vsel %vm2887_vm3, %v427_v22, %v467_v15  ;;  %v3249_v27 = vld [vmem:[#allocation2 + $0xc0] sm:$0xff] }
  0x4f   : > { %2509 = vmatpush3.bf16.msra.mxu1 %v2734_v26  ;;  %1171 = vmatprep.mubr.bf16.mxu1 %v2871_v21  ;;  %v2743_v21 = vld [vmem:[%s3498_s1 + $0x98] sm:$0xff]   ;;  %v2748_v26 = vld [vmem:[%s3498_s1 + $0xa8] sm:$0xff]   ;;  %374 = vst [vmem:[#allocation2 + $0xd8] sm:$0xff] %v373_v23  ;;  %469 = vst [vmem:[#allocation2 + $0xe8] sm:$0xff] %v468_v25 }
  0x50   : > { %2510 = vmatprep.subr.bf16.mxu1 %v2737_v31 }
  0x52   : > { %866 = vmatmul.mubr.bf16.gmra.mrb[20].mxu0 %v3213_v2 }
  0x53   : > { %873 = vmatprep.mubr.bf16.mxu0 %v3026_v58  ;;  %2511 = vmatpush3.bf16.msra.mxu1 %v2737_v31 }
  0x54   : > { %2512 = vmatprep.subr.bf16.mxu1 %v2740_v4 }
  0x56   : > { %1172 = vmatmul.mubr.bf16.gmra.mrb[20].mxu1 %v2967_v20  ;;  %v474_v20 = vsel %vm2913_vm9, 0, %v473_v14  ;;  %v405_v33 = vld [vmem:[#allocation2 + $0xd8] sm:$0x1]  ;;  %v500_v28 = vld [vmem:[#allocation2 + $0xe8] sm:$0x80] }
  0x57   : > { %1179 = vmatprep.mubr.bf16.mxu1 %v2892_v32  ;;  %2513 = vmatpush3.bf16.msra.mxu1 %v2740_v4  ;;  %475 = vst [vmem:[#allocation2 + $0x10] sm:$0x80] %v474_v20  ;;  %v406_v34 = vsel %vm2927_vm10, 0, %v405_v33  ;;  %v501_v36 = vsel %vm2913_vm9, 0, %v500_v28 }
  0x58   : > { %2514 = vmatprep.subr.bf16.mxu1 %v2743_v21  ;;  %407 = vst [vmem:[#allocation2 + $0xd8] sm:$0x1] %v406_v34  ;;  %502 = vst [vmem:[#allocation2 + $0xe8] sm:$0x80] %v501_v36 }
  0x5a   : > { %874 = vmatmul.mubr.bf16.gmra.mrb[24].mxu0 %v3229_v45 }
  0x5b   : > { %881 = vmatprep.mubr.bf16.mxu0 %v3041_v0  ;;  %2515 = vmatpush3.bf16.msra.mxu1 %v2743_v21 }
  0x5c   : > { %2516 = vmatprep.subr.bf16.mxu1 %v2746_v9 }
  0x5e   : > { %1180 = vmatmul.mubr.bf16.gmra.mrb[24].mxu1 %v3011_v46 }
  0x5f   : > { %1187 = vmatprep.mubr.bf16.mxu1 %v2920_v49  ;;  %2517 = vmatpush3.bf16.msra.mxu1 %v2746_v9 }
  0x60   : > { %2518 = vmatprep.subr.bf16.mxu1 %v2748_v26 }
  0x62   : > { %882 = vmatmul.mubr.bf16.gmra.mrb[28].mxu0 %v3249_v27 }
  0x63   : > { %1575 = vmatprep.mubr.bf16.mxu0 %v2892_v32  ;;  %2519 = vmatpush3.bf16.msra.mxu1 %v2748_v26  ;;  %v2749_v32 = vld [vmem:[%s3498_s1 + $0x208] sm:$0xff]  }
  0x64   : > { %2520 = vmatprep.subr.bf16.mxu1 %v2750_v29 }
  0x66   : > { %1188 = vmatmul.mubr.bf16.gmra.mrb[28].mxu1 %v3071_v16 }
  0x67   : > { %1195 = vmatprep.mubr.bf16.mxu1 %v2925_v52  ;;  %2521 = vmatpush3.bf16.msra.mxu1 %v2750_v29 }
  0x68   : > { %2522 = vmatprep.subr.bf16.mxu1 %v2752_v8 }
  0x6a   : > { %1576 = vmatmul.mubr.bf16.vlgmr.msra.gmra.mrb[32].mxu0 %v3011_v46  ;;  %v2755_v46 = vld [vmem:[%s3498_s1 + $0x228] sm:$0xff]  }
  0x6b   : > { %2541 = vmatpush3.bf16.msra.mxu0 %v3200_v55  ;;  %1583 = vmatprep.mubr.bf16.mxu0 %v2920_v49  ;;  %v2754_v49 = vld [vmem:[%s3498_s1 + $0x220] sm:$0xff]  }
  0x6c   : > { %2542 = vmatprep.subr.bf16.mxu0 %v2749_v32  ;;  %2523 = vmatpush3.bf16.msra.mxu1 %v2752_v8 }
  0x6d   : > { %2572 = vmatprep.subr.bf16.mxu1 %v3200_v55 }
  0x6e   : > { %1196 = vmatmul.mubr.bf16.gmra.mrb[32].mxu1 %v3141_v10 }
  0x6f   : > { %2543 = vmatpush3.bf16.msra.mxu0 %v2749_v32  ;;  %1203 = vmatprep.mubr.bf16.mxu1 %v2955_v13 }
  0x70   : > { %2544 = vmatprep.subr.bf16.mxu0 %v2751_v47 }
  0x72   : > { %1584 = vmatmul.mubr.bf16.gmra.mrb[36].mxu0 %v3071_v16  ;;  %v2758_v16 = vld [vmem:[%s3498_s1 + $0x238] sm:$0xff]  }
  0x73   : > { %1591 = vmatprep.mubr.bf16.mxu0 %v2925_v52  ;;  %2545 = vmatpush3.bf16.msra.mxu0 %v2751_v47  ;;  %v2756_v52 = vld [vmem:[%s3498_s1 + $0x230] sm:$0xff]  }
  0x74   : > { %2546 = vmatprep.subr.bf16.mxu0 %v2753_v53 }
  0x76   : > { %1204 = vmatmul.mubr.bf16.gmra.mrb[36].mxu1 %v3192_v50 }
  0x77   : > { %2547 = vmatpush3.bf16.msra.mxu0 %v2753_v53  ;;  %1211 = vmatprep.mubr.bf16.mxu1 %v2976_v24 }
  0x78   : > { %2548 = vmatprep.subr.bf16.mxu0 %v2754_v49 }
  0x7a   : > { %1592 = vmatmul.mubr.bf16.gmra.mrb[40].mxu0 %v3141_v10 }
  0x7b   : > { %1599 = vmatprep.mubr.bf16.mxu0 %v2955_v13  ;;  %2549 = vmatpush3.bf16.msra.mxu0 %v2754_v49  ;;  %v505_v13 = vld [vmem:[#allocation2 + $0x10] sm:$0xff] }
  0x7c   : > { %2550 = vmatprep.subr.bf16.mxu0 %v2755_v46 }
  0x7e   : > { %1212 = vmatmul.mubr.bf16.gmra.mrb[40].mxu1 %v3213_v2 }
  0x7f   : > { %2551 = vmatpush3.bf16.msra.mxu0 %v2755_v46  ;;  %1219 = vmatprep.mubr.bf16.mxu1 %v3026_v58 }
  0x80   : > { %2552 = vmatprep.subr.bf16.mxu0 %v2756_v52 }
  0x82   : > { %1600 = vmatmul.mubr.bf16.gmra.mrb[44].mxu0 %v3192_v50 }
  0x83   : > { %1607 = vmatprep.mubr.bf16.mxu0 %v2976_v24  ;;  %2553 = vmatpush3.bf16.msra.mxu0 %v2756_v52  ;;  %v1328_v24 = vld [vmem:[#allocation2 + $0x40] sm:$0xff] }
  0x84   : > { %2554 = vmatprep.subr.bf16.mxu0 %v2758_v16 }
  0x86   : > { %1220 = vmatmul.mubr.bf16.gmra.mrb[44].mxu1 %v3229_v45 }
  0x87   : > { %2555 = vmatpush3.bf16.msra.mxu0 %v2758_v16  ;;  %2524 = vmatprep.mubr.bf16.mxu1 %v505_v13 }
  0x8a   : > { %1608 = vmatmul.mubr.bf16.gmra.mrb[48].mxu0 %v3213_v2 }
  0x8b   : > { %1615 = vmatprep.mubr.bf16.mxu0 %v3026_v58 }
  0x8e   : > { %2525 = vmatmul.mubr.bf16.vlgmr.msra.gmra.mrb[0].mxu1 %v2965_v19  ;;  %v1347_v19 = vld [vmem:[#allocation2 + $0xd8] sm:$0xff] }
  0x8f   : > { %2580 = vmatpush3.bf16.msra.mxu1 %v3200_v55  ;;  %2528 = vmatprep.mubr.bf16.mxu1 %v2994_v37  ;;  %v1349_v37 = vld [vmem:[#allocation2 + $0xe8] sm:$0xff] }
  0x90   : > { %2573 = vmatprep.subr.bf16.mxu1 %v2749_v32 }
  0x92   : > { %1616 = vmatmul.mubr.bf16.gmra.mrb[52].mxu0 %v3229_v45 }
  0x93   : > { %1623 = vmatprep.mubr.bf16.mxu0 %v3041_v0  ;;  %2581 = vmatpush3.bf16.msra.mxu1 %v2749_v32 }
  0x94   : > { %2574 = vmatprep.subr.bf16.mxu1 %v2751_v47 }
  0x96   : > { %2529 = vmatmul.mubr.bf16.gmra.mrb[4].mxu1 %v3043_v1 }
  0x97   : > { %2582 = vmatpush3.bf16.msra.mxu1 %v2751_v47  ;;  %2532 = vmatprep.mubr.bf16.mxu1 %v3048_v3 }
  0x98   : > { %2575 = vmatprep.subr.bf16.mxu1 %v2753_v53 }
  0x9a   : > { %1624 = vmatmul.mubr.bf16.gmra.mrb[56].mxu0 %v3249_v27 }
  0x9b   : > { %1631 = vmatprep.mubr.bf16.mxu0 %v3224_v30  ;;  %2583 = vmatpush3.bf16.msra.mxu1 %v2753_v53 }
  0x9c   : > { %2576 = vmatprep.subr.bf16.mxu1 %v2754_v49 }
  0x9e   : > { %2533 = vmatmul.mubr.bf16.gmra.mrb[8].mxu1 %v3102_v42 }
  0x9f   : > { %2584 = vmatpush3.bf16.msra.mxu1 %v2754_v49  ;;  %2536 = vmatprep.mubr.bf16.mxu1 %v3119_v56 }
  0xa0   : > { %2577 = vmatprep.subr.bf16.mxu1 %v2755_v46 }
  0xa2   : > { %1632 = vmatmul.mubr.bf16.gmra.mrb[60].mxu0 %v1347_v19 }
  0xa3   : > { %2556 = vmatprep.mubr.bf16.mxu0 %v1328_v24  ;;  %2585 = vmatpush3.bf16.msra.mxu1 %v2755_v46 }
  0xa4   : > { %2578 = vmatprep.subr.bf16.mxu1 %v2756_v52 }
  0xa6   : > { %2537 = vmatmul.mubr.bf16.gmra.mrb[12].mxu1 %v3173_v35 }
  0xa7   : > { %2586 = vmatpush3.bf16.msra.mxu1 %v2756_v52  ;;  %2564 = vmatprep.mubr.bf16.mxu1 %v3119_v56 }
  0xa8   : > { %2579 = vmatprep.subr.bf16.mxu1 %v2758_v16 }
  0xaa   : > { %2557 = vmatmul.mubr.bf16.vlgmr.msra.gmra.mrb[64].mxu0 %v3043_v1 }
  0xab   : > { %2560 = vmatprep.mubr.bf16.mxu0 %v3048_v3  ;;  %2587 = vmatpush3.bf16.msra.mxu1 %v2758_v16 }
  0xae   : > { %2565 = vmatmul.mubr.bf16.vlgmr.msra.gmra.mrb[8].mxu1 %v3173_v35 }
  0xaf   : > { %2568 = vmatprep.mubr.bf16.mxu1 %v3178_v39 }
  0xb2   : > { %2561 = vmatmul.mubr.bf16.gmra.mrb[68].mxu0 %v3102_v42 }
  0xb6   : > { %2569 = vmatmul.mubr.bf16.gmra.mrb[12].mxu1 %v1349_v37 }
  0xfd   : > { %v2252_v58 = vpop.f32.mrb[0].mxu0 }
  0xfe   : > { %v2253_v0 = vpop.f32.mrb[1].mxu0 }
  0xff   : > { %v2254_v10 = vadd.f32 %v2253_v0, %v2252_v58  ;;  %v2255_v38 = vpop.f32.mrb[2].mxu0 }
 0x100   : > { %v2256_v40 = vpop.f32.mrb[3].mxu0 }
 0x101   : > { %v2257_v56 = vadd.f32 %v2256_v40, %v2255_v38 }
 0x105   : > { %v2258_v17 = vpop.f32.mrb[4].mxu0 }
 0x106   : > { %v2259_v41 = vpop.f32.mrb[5].mxu0 }
 0x107   : > { %v2260_v1 = vadd.f32 %v2259_v41, %v2258_v17  ;;  %v2261_v43 = vpop.f32.mrb[6].mxu0 }
 0x108   : > { %v2262_v3 = vpop.f32.mrb[7].mxu0 }
 0x109   : > { %v2263_v44 = vadd.f32 %v2262_v3, %v2261_v43 }
 0x10d   : > { %v2264_v50 = vpop.f32.mrb[8].mxu0 }
 0x10e   : > { %v2265_v35 = vpop.f32.mrb[9].mxu0 }
 0x10f   : > { %v2266_v51 = vadd.f32 %v2265_v35, %v2264_v50  ;;  %v2267_v39 = vpop.f32.mrb[10].mxu0 }
 0x110   : > { %v2268_v54 = vpop.f32.mrb[11].mxu0 }
 0x111   : > { %v2269_v42 = vadd.f32 %v2268_v54, %v2267_v39 }
 0x115   : > { %v2270_v55 = vpop.f32.mrb[12].mxu0 }
 0x116   : > { %v2271_v59 = vpop.f32.mrb[13].mxu0 }
 0x117   : > { %v2272_v57 = vadd.f32 %v2271_v59, %v2270_v55  ;;  %v2273_v60 = vpop.f32.mrb[14].mxu0 }
 0x118   : > { %v2274_v31 = vpop.f32.mrb[15].mxu0 }
 0x119   : > { %v2275_v63 = vadd.f32 %v2274_v31, %v2273_v60 }
 0x11d   : > { %v2276_v61 = vpop.f32.mrb[16].mxu0 }
 0x11e   : > { %v2277_v2 = vpop.f32.mrb[17].mxu0 }
 0x11f   : > { %v3325_v48 = vadd.f32 %v2277_v2, %v2276_v61  ;;  %v2279_v4 = vpop.f32.mrb[18].mxu0 }
 0x120   : > { %v2280_v5 = vpop.f32.mrb[19].mxu0 }
 0x121   : > { %v3327_v30 = vadd.f32 %v2280_v5, %v2279_v4  ;;  %v2332_v21 = vpop.f32.mrb[16].mxu1 }
 0x122   : > { %v2333_v45 = vpop.f32.mrb[17].mxu1 }
 0x123   : > { %v2334_v6 = vadd.f32 %v2333_v45, %v2332_v21  ;;  %v2335_v7 = vpop.f32.mrb[18].mxu1 }
 0x124   : > { %v2336_v11 = vpop.f32.mrb[19].mxu1 }
 0x125   : > { %v2282_v9 = vpop.f32.mrb[20].mxu0  ;;  %v2337_v14 = vadd.f32 %v2336_v11, %v2335_v7  ;;  %v3331_v20 = vadd.f32 %v2334_v6, %v2254_v10 }
 0x126   : > { %v2283_v12 = vpop.f32.mrb[21].mxu0 }
 0x127   : > { %v3329_v62 = vadd.f32 %v2283_v12, %v2282_v9  ;;  %v2285_v15 = vpop.f32.mrb[22].mxu0  ;;  %v3335_v23 = vadd.f32 %v2337_v14, %v2257_v56 }
 0x128   : > { %v2286_v18 = vpop.f32.mrb[23].mxu0 }
 0x129   : > { %v3333_v22 = vadd.f32 %v2286_v18, %v2285_v15  ;;  %v2338_v25 = vpop.f32.mrb[20].mxu1 }
 0x12a   : > { %v2339_v26 = vpop.f32.mrb[21].mxu1 }
 0x12b   : > { %v2340_v27 = vadd.f32 %v2339_v26, %v2338_v25  ;;  %v2341_v29 = vpop.f32.mrb[22].mxu1 }
 0x12c   : > { %v2342_v28 = vpop.f32.mrb[23].mxu1 }
 0x12d   : > { %v2288_v33 = vpop.f32.mrb[24].mxu0  ;;  %v2343_v34 = vadd.f32 %v2342_v28, %v2341_v29  ;;  %v3339_v47 = vadd.f32 %v2340_v27, %v2260_v1 }
 0x12e   : > { %v2289_v8 = vpop.f32.mrb[25].mxu0 }
 0x12f   : > { %v3337_v36 = vadd.f32 %v2289_v8, %v2288_v33  ;;  %v2291_v32 = vpop.f32.mrb[26].mxu0  ;;  %v3343_v46 = vadd.f32 %v2343_v34, %v2263_v44 }
 0x130   : > { %v2292_v53 = vpop.f32.mrb[27].mxu0 }
 0x131   : > { %v3341_v49 = vadd.f32 %v2292_v53, %v2291_v32  ;;  %v2344_v52 = vpop.f32.mrb[24].mxu1 }
 0x132   : > { %v2345_v16 = vpop.f32.mrb[25].mxu1 }
 0x133   : > { %v2346_v13 = vadd.f32 %v2345_v16, %v2344_v52  ;;  %v2347_v19 = vpop.f32.mrb[26].mxu1 }
 0x134   : > { %v2348_v37 = vpop.f32.mrb[27].mxu1 }
 0x135   : > { %v2294_v24 = vpop.f32.mrb[28].mxu0  ;;  %v2349_v0 = vadd.f32 %v2348_v37, %v2347_v19  ;;  %v3347_v40 = vadd.f32 %v2346_v13, %v2266_v51 }
 0x136   : > { %v2295_v58 = vpop.f32.mrb[29].mxu0 }
 0x137   : > { %v3345_v10 = vadd.f32 %v2295_v58, %v2294_v24  ;;  %v2297_v38 = vpop.f32.mrb[30].mxu0  ;;  %v3351_v41 = vadd.f32 %v2349_v0, %v2269_v42 }
 0x138   : > { %v2298_v56 = vpop.f32.mrb[31].mxu0 }
 0x139   : > { %v3349_v17 = vadd.f32 %v2298_v56, %v2297_v38  ;;  %v2350_v1 = vpop.f32.mrb[28].mxu1 }
 0x13a   : > { %v2351_v43 = vpop.f32.mrb[29].mxu1 }
 0x13b   : > { %v2352_v3 = vadd.f32 %v2351_v43, %v2350_v1  ;;  %v2353_v44 = vpop.f32.mrb[30].mxu1 }
 0x13c   : > { %v2354_v35 = vpop.f32.mrb[31].mxu1 }
 0x13d   : > { %v2412_v50 = vpop.f32.mrb[32].mxu0  ;;  %v2355_v54 = vadd.f32 %v2354_v35, %v2353_v44  ;;  %v3355_v60 = vadd.f32 %v2352_v3, %v2272_v57 }
 0x13e   : > { %v2413_v39 = vpop.f32.mrb[33].mxu0 }
 0x13f   : > { %v3353_v55 = vadd.f32 %v2413_v39, %v2412_v50  ;;  %v2415_v59 = vpop.f32.mrb[34].mxu0  ;;  %v3359_v61 = vadd.f32 %v2355_v54, %v2275_v63 }
 0x140   : > { %v2416_v51 = vpop.f32.mrb[35].mxu0 }
 0x141   : > { %v3357_v31 = vadd.f32 %v2416_v51, %v2415_v59  ;;  %v2356_v42 = vpop.f32.mrb[32].mxu1 }
 0x142   : > { %v2357_v2 = vpop.f32.mrb[33].mxu1 }
 0x143   : > { %v2358_v4 = vadd.f32 %v2357_v2, %v2356_v42  ;;  %v2359_v5 = vpop.f32.mrb[34].mxu1 }
 0x144   : > { %v2360_v45 = vpop.f32.mrb[35].mxu1 }
 0x145   : > { %v2418_v21 = vpop.f32.mrb[36].mxu0  ;;  %v2623_v7 = vadd.f32 %v2358_v4, %v3325_v48  ;;  %v2361_v9 = vadd.f32 %v2360_v45, %v2359_v5 }
 0x146   : > { %v2419_v6 = vpop.f32.mrb[37].mxu0 }
 0x147   : > { %v2420_v11 = vadd.f32 %v2419_v6, %v2418_v21  ;;  %v2421_v12 = vpop.f32.mrb[38].mxu0  ;;  %v2629_v57 = vadd.f32 %v2361_v9, %v3327_v30 }
 0x148   : > { %v2422_v14 = vpop.f32.mrb[39].mxu0 }
 0x149   : > { %v2423_v15 = vadd.f32 %v2422_v14, %v2421_v12  ;;  %v2362_v18 = vpop.f32.mrb[36].mxu1 }
 0x14a   : > { %v2363_v25 = vpop.f32.mrb[37].mxu1 }
 0x14b   : > { %v2364_v63 = vadd.f32 %v2363_v25, %v2362_v18  ;;  %v2365_v26 = vpop.f32.mrb[38].mxu1 }
 0x14c   : > { %v2366_v29 = vpop.f32.mrb[39].mxu1 }
 0x14d   : > { %v2424_v27 = vpop.f32.mrb[40].mxu0  ;;  %v2620_v28 = vadd.f32 %v2364_v63, %v3329_v62  ;;  %v2367_v8 = vadd.f32 %v2366_v29, %v2365_v26 }
 0x14e   : > { %v2425_v33 = vpop.f32.mrb[41].mxu0 }
 0x14f   : > { %v3364_v34 = vadd.f32 %v2425_v33, %v2424_v27  ;;  %v2427_v48 = vpop.f32.mrb[42].mxu0  ;;  %v2626_v53 = vadd.f32 %v2367_v8, %v3333_v22 }
 0x150   : > { %v2428_v32 = vpop.f32.mrb[43].mxu0 }
 0x151   : > { %v3367_v52 = vadd.f32 %v2428_v32, %v2427_v48  ;;  %v2368_v30 = vpop.f32.mrb[40].mxu1 }
 0x152   : > { %v2369_v16 = vpop.f32.mrb[41].mxu1 }
 0x153   : > { %v2370_v13 = vadd.f32 %v2369_v16, %v2368_v30  ;;  %v2371_v19 = vpop.f32.mrb[42].mxu1 }
 0x154   : > { %v2372_v37 = vpop.f32.mrb[43].mxu1 }
 0x155   : > { %v2430_v24 = vpop.f32.mrb[44].mxu0  ;;  %v2635_v0 = vadd.f32 %v2370_v13, %v3337_v36  ;;  %v2373_v38 = vadd.f32 %v2372_v37, %v2371_v19 }
 0x156   : > { %v2431_v58 = vpop.f32.mrb[45].mxu0 }
 0x157   : > { %v2432_v62 = vadd.f32 %v2431_v58, %v2430_v24  ;;  %v2433_v56 = vpop.f32.mrb[46].mxu0  ;;  %v2641_v43 = vadd.f32 %v2373_v38, %v3341_v49 }
 0x158   : > { %v2434_v1 = vpop.f32.mrb[47].mxu0 }
 0x159   : > { %v2435_v3 = vadd.f32 %v2434_v1, %v2433_v56  ;;  %v2374_v44 = vpop.f32.mrb[44].mxu1 }
 0x15a   : > { %v2375_v22 = vpop.f32.mrb[45].mxu1 }
 0x15b   : > { %v2376_v50 = vadd.f32 %v2375_v22, %v2374_v44  ;;  %v2377_v35 = vpop.f32.mrb[46].mxu1 }
 0x15c   : > { %v2378_v54 = vpop.f32.mrb[47].mxu1 }
 0x15d   : > { %v2436_v39 = vpop.f32.mrb[48].mxu0  ;;  %v2632_v51 = vadd.f32 %v2376_v50, %v3345_v10  ;;  %v2379_v42 = vadd.f32 %v2378_v54, %v2377_v35  ;;  %v3411_v54 = vld [vmem:[#allocation2 + $0x80] sm:$0xff] }
 0x15e   : > { %v2437_v59 = vpop.f32.mrb[49].mxu0 }
 0x15f   : > { %v2438_v2 = vadd.f32 %v2437_v59, %v2436_v39  ;;  %v2439_v4 = vpop.f32.mrb[50].mxu0  ;;  %v2638_v5 = vadd.f32 %v2379_v42, %v3349_v17 }
 0x160   : > { %v2440_v36 = vpop.f32.mrb[51].mxu0 }
 0x161   : > { %v2441_v21 = vadd.f32 %v2440_v36, %v2439_v4  ;;  %v3373_v45 = vadd.f32 %v2623_v7, %v2438_v2  ;;  %v2526_v49 = vpop.f32.mrb[0].mxu1 }
 0x162   : > { %v2589_v9 = vadd.f32 %v3339_v47, %v2526_v49  ;;  %v1262_v12 = vpop.f32.mrb[1].mxu1  ;;  %v3420_v49 = vld [vmem:[#allocation2 + $0x68] sm:$0xff] }
 0x163   : > { %v3375_v6 = vadd.f32 %v2629_v57, %v2441_v21  ;;  %v2593_v14 = vadd.f32 %v3331_v20, %v1262_v12  ;;  %v2527_v18 = vpop.f32.mrb[2].mxu1 }
 0x164   : > { %v2597_v10 = vadd.f32 %v3343_v46, %v2527_v18  ;;  %v1265_v63 = vpop.f32.mrb[3].mxu1  ;;  %v2590_v27 = vadd.f32 %v2589_v9, %v2420_v11  ;;  %v3422_v9 = vld [vmem:[#allocation2 + $0xc8] sm:$0xff] }
 0x165   : > { %v2442_v25 = vpop.f32.mrb[52].mxu0  ;;  %v2601_v17 = vadd.f32 %v3335_v23, %v1265_v63  ;;  %v2594_v33 = vadd.f32 %v2593_v14, %v3353_v55  ;;  %v3426_v63 = vld [vmem:[#allocation2 + $0x50] sm:$0xff] }
 0x166   : > { %v2443_v26 = vpop.f32.mrb[53].mxu0  ;;  %v2598_v8 = vadd.f32 %v2597_v10, %v2423_v15 }
 0x167   : > { %v2444_v29 = vadd.f32 %v2443_v26, %v2442_v25  ;;  %v2445_v7 = vpop.f32.mrb[54].mxu0  ;;  %v2602_v20 = vadd.f32 %v2601_v17, %v3357_v31  ;;  %v3428_v26 = vld [vmem:[#allocation2 + $0xb0] sm:$0xff] }
 0x168   : > { %v2446_v57 = vpop.f32.mrb[55].mxu0 }
 0x169   : > { %v2447_v48 = vadd.f32 %v2446_v57, %v2445_v7  ;;  %v3382_v47 = vadd.f32 %v2620_v28, %v2444_v29  ;;  %v2530_v32 = vpop.f32.mrb[4].mxu1  ;;  %v1809_v7 = vunpack.c.h.bf16 %v3411_v54 }
 0x16a   : > { %v2605_v46 = vadd.f32 %v3355_v60, %v2530_v32  ;;  %v1278_v16 = vpop.f32.mrb[5].mxu1 }
 0x16b   : > { %v3385_v30 = vadd.f32 %v2626_v53, %v2447_v48  ;;  %v2609_v11 = vadd.f32 %v3347_v40, %v1278_v16  ;;  %v2531_v23 = vpop.f32.mrb[6].mxu1  ;;  %v1814_v48 = vunpack.c.l.bf16 %v3422_v9 }
 0x16c   : > { %v2613_v19 = vadd.f32 %v3359_v61, %v2531_v23  ;;  %v1281_v55 = vpop.f32.mrb[7].mxu1  ;;  %v3390_v15 = vadd.f32 %v2605_v46, %v2432_v62  ;;  %v1812_v23 = vunpack.c.l.bf16 %v3428_v26 }
 0x16d   : > { %v2448_v13 = vpop.f32.mrb[56].mxu0  ;;  %v2617_v28 = vadd.f32 %v3351_v41, %v1281_v55  ;;  %v3394_v53 = vadd.f32 %v2609_v11, %v3364_v34  ;;  %v1793_v34 = vld [vmem:[#allocation2 + $0x38] sm:$0xff]  ;;  %v1804_v11 = vunpack.c.l.bf16 %v3426_v63  ;;  %v1807_v55 = vunpack.c.h.bf16 %v3420_v49 }
 0x16e   : > { %v2449_v24 = vpop.f32.mrb[57].mxu0  ;;  %v3396_v60 = vadd.f32 %v2613_v19, %v2435_v3  ;;  %v3409_v3 = vld [vmem:[#allocation2 + $0x98] sm:$0xff]  ;;  %v1802_v42 = vunpack.c.l.bf16 %v1793_v34  ;;  %v1803_v18 = vunpack.c.h.bf16 %v1793_v34 }
 0x16f   : > { %v2450_v37 = vadd.f32 %v2449_v24, %v2448_v13  ;;  %v2451_v31 = vpop.f32.mrb[58].mxu0  ;;  %v3401_v56 = vadd.f32 %v2617_v28, %v3367_v52  ;;  %v1811_v25 = vunpack.c.h.bf16 %v3409_v3  ;;  %v1815_v24 = vunpack.c.h.bf16 %v3422_v9 }
 0x170   : > { %v2452_v58 = vpop.f32.mrb[59].mxu0 }
 0x171   : > { %v2453_v38 = vadd.f32 %v2452_v58, %v2451_v31  ;;  %v3398_v40 = vadd.f32 %v2635_v0, %v2450_v37  ;;  %v1792_v0 = vld [vmem:[#allocation2 + $0x20] sm:$0xff] }
 0x172   : > { %v1800_v36 = vunpack.c.l.bf16 %v1792_v0  ;;  %v1801_v29 = vunpack.c.h.bf16 %v1792_v0 }
 0x173   : > { %v3403_v61 = vadd.f32 %v2641_v43, %v2453_v38  ;;  %v3416_v43 = vld [vmem:[%s3499_s2] ss:$0 sm:$0xff] }
 0x175   : > { %v2454_v62 = vpop.f32.mrb[60].mxu0 }
 0x176   : > { %v2455_v1 = vpop.f32.mrb[61].mxu0 }
 0x177   : > { %v2456_v44 = vadd.f32 %v2455_v1, %v2454_v62  ;;  %v2457_v41 = vpop.f32.mrb[62].mxu0 }
 0x178   : > { %v2458_v22 = vpop.f32.mrb[63].mxu0 }
 0x179   : > { %v2459_v50 = vadd.f32 %v2458_v22, %v2457_v41  ;;  %v3405_v35 = vadd.f32 %v2632_v51, %v2456_v44  ;;  %v1810_v51 = vunpack.c.l.bf16 %v3409_v3 }
 0x17b   : > { %v3407_v39 = vadd.f32 %v2638_v5, %v2459_v50  ;;  %v1808_v5 = vunpack.c.l.bf16 %v3411_v54 }
 0x17d   : > { %v2558_v52 = vpop.f32.mrb[64].mxu0 }
 0x17e   : > { %v2591_v59 = vadd.f32 %v2590_v27, %v2558_v52  ;;  %v1674_v2 = vpop.f32.mrb[65].mxu0 }
 0x17f   : > { %v2595_v4 = vadd.f32 %v2594_v33, %v1674_v2  ;;  %v2559_v21 = vpop.f32.mrb[66].mxu0 }
 0x180   : > { %v1762_v12 = vadd.f32 %v2591_v59, %v3416_v43  ;;  %v2599_v14 = vadd.f32 %v2598_v8, %v2559_v21  ;;  %v1677_v10 = vpop.f32.mrb[67].mxu0  ;;  %v1806_v8 = vunpack.c.l.bf16 %v3420_v49 }
 0x181   : > { %v1760_v27 = vadd.f32 %v2595_v4, %v3416_v43  ;;  %v2603_v17 = vadd.f32 %v2602_v20, %v1677_v10  ;;  %v2566_v32 = vpop.f32.mrb[8].mxu1  ;;  %v1813_v10 = vunpack.c.h.bf16 %v3428_v26 }
 0x182   : > { %v1778_v33 = vmax.f32 %v1762_v12, 0.0  ;;  %v1763_v57 = vadd.f32 %v2599_v14, %v3416_v43  ;;  %v2622_v20 = vadd.f32 %v3382_v47, %v2566_v32  ;;  %v1706_v13 = vpop.f32.mrb[9].mxu1 }
 0x183   : > { %v1776_v46 = vmax.f32 %v1760_v27, 0.0  ;;  %v1761_v16 = vadd.f32 %v2603_v17, %v3416_v43  ;;  %v2625_v31 = vadd.f32 %v3373_v45, %v1706_v13  ;;  %v2567_v58 = vpop.f32.mrb[10].mxu1 }
 0x184   : > { %v1779_v19 = vmax.f32 %v1763_v57, 0.0  ;;  %v1818_v28 = vadd.f32 %v1802_v42, %v1778_v33  ;;  %v1770_v1 = vadd.f32 %v2622_v20, %v3416_v43  ;;  %v2628_v41 = vadd.f32 %v3385_v30, %v2567_v58  ;;  %v1709_v47 = vpop.f32.mrb[11].mxu1 }
 0x185   : > { %v1816_v37 = vadd.f32 %v1800_v36, %v1776_v46  ;;  %v1777_v38 = vmax.f32 %v1761_v16, 0.0  ;;  %v2562_v62 = vpop.f32.mrb[68].mxu0  ;;  %v1768_v34 = vadd.f32 %v2625_v31, %v3416_v43  ;;  %v2631_v0 = vadd.f32 %v3375_v6, %v1709_v47 }
 0x186   : > { %v1819_v44 = vadd.f32 %v1803_v18, %v1779_v19  ;;  %v2607_v22 = vadd.f32 %v3390_v15, %v2562_v62  ;;  %v1690_v50 = vpop.f32.mrb[69].mxu0  ;;  %v1786_v30 = vmax.f32 %v1770_v1, 0.0  ;;  %v1771_v15 = vadd.f32 %v2628_v41, %v3416_v43 }
 0x187   : > { %v1817_v45 = vadd.f32 %v1801_v29, %v1777_v38  ;;  %v2611_v52 = vadd.f32 %v3394_v53, %v1690_v50  ;;  %v2563_v59 = vpop.f32.mrb[70].mxu0  ;;  %v1784_v36 = vmax.f32 %v1768_v34, 0.0  ;;  %v1769_v12 = vadd.f32 %v2631_v0, %v3416_v43 }
 0x188   : > { %v2197_v42 = vpack.c.bf16 %v1819_v44, %v1818_v28  ;;  %v1766_v2 = vadd.f32 %v2607_v22, %v3416_v43  ;;  %v1693_v4 = vpop.f32.mrb[71].mxu0  ;;  %v1787_v18 = vmax.f32 %v1771_v15, 0.0  ;;  %v2615_v6 = vadd.f32 %v3396_v60, %v2563_v59 }
 0x189   : > { %v2192_v21 = vpack.c.bf16 %v1817_v45, %v1816_v37  ;;  %v1764_v14 = vadd.f32 %v2611_v52, %v3416_v43  ;;  %v1805_v53 = vunpack.c.h.bf16 %v3426_v63  ;;  %v1826_v27 = vadd.f32 %v1810_v51, %v1786_v30  ;;  %v2570_v33 = vpop.f32.mrb[12].mxu1 }
 0x18a   : > { %2229 = vst [vmem:[%s3450_s19 + $0x8] sm:$0xff] %v2197_v42   ;;  %v1785_v17 = vmax.f32 %v1769_v12, 0.0  ;;  %v1782_v29 = vmax.f32 %v1766_v2, 0.0  ;;  %v2619_v57 = vadd.f32 %v3401_v56, %v1693_v4  ;;  %v1824_v32 = vadd.f32 %v1808_v5, %v1784_v36  ;;  %v1722_v60 = vpop.f32.mrb[13].mxu1 }
 0x18b   : > { %2193 = vst [vmem:[%s3450_s19] sm:$0xff] %v2192_v21   ;;  %v1827_v46 = vadd.f32 %v1811_v25, %v1787_v18  ;;  %v2634_v16 = vadd.f32 %v3405_v35, %v2570_v33  ;;  %v1767_v20 = vadd.f32 %v2615_v6, %v3416_v43  ;;  %v1780_v19 = vmax.f32 %v1764_v14, 0.0  ;;  %v2571_v51 = vpop.f32.mrb[14].mxu1 }
 0x18c   : > { %v1825_v13 = vadd.f32 %v1809_v7, %v1785_v17  ;;  %v2637_v3 = vadd.f32 %v3398_v40, %v1722_v60  ;;  %v1765_v28 = vadd.f32 %v2619_v57, %v3416_v43  ;;  %v2640_v5 = vadd.f32 %v3407_v39, %v2571_v51  ;;  %v1725_v25 = vpop.f32.mrb[15].mxu1 }
 0x18d   : > { %v2217_v37 = vpack.c.bf16 %v1827_v46, %v1826_v27  ;;  %v1774_v56 = vadd.f32 %v2634_v16, %v3416_v43  ;;  %v1783_v54 = vmax.f32 %v1767_v20, 0.0  ;;  %v2643_v7 = vadd.f32 %v3403_v61, %v1725_v25 }
 0x18e   : > { %v2212_v35 = vpack.c.bf16 %v1825_v13, %v1824_v32  ;;  %v1772_v31 = vadd.f32 %v2637_v3, %v3416_v43  ;;  %v1781_v58 = vmax.f32 %v1765_v28, 0.0  ;;  %v1822_v40 = vadd.f32 %v1806_v8, %v1782_v29 }
 0x18f   : > { %2233 = vst [vmem:[%s3450_s19 + $0x28] sm:$0xff] %v2217_v37   ;;  %v1790_v38 = vmax.f32 %v1774_v56, 0.0  ;;  %v1823_v62 = vadd.f32 %v1807_v55, %v1783_v54  ;;  %v1775_v1 = vadd.f32 %v2640_v5, %v3416_v43  ;;  %v1820_v39 = vadd.f32 %v1804_v11, %v1780_v19 }
 0x190   : > { %2232 = vst [vmem:[%s3450_s19 + $0x20] sm:$0xff] %v2212_v35   ;;  %v1788_v44 = vmax.f32 %v1772_v31, 0.0  ;;  %v1821_v41 = vadd.f32 %v1805_v53, %v1781_v58  ;;  %v1773_v61 = vadd.f32 %v2643_v7, %v3416_v43 }
 0x191   : > { %v2207_v47 = vpack.c.bf16 %v1823_v62, %v1822_v40  ;;  %v1791_v22 = vmax.f32 %v1775_v1, 0.0  ;;  %v1830_v8 = vadd.f32 %v1814_v48, %v1790_v38 }
 0x192   : > { %v2202_v50 = vpack.c.bf16 %v1821_v41, %v1820_v39  ;;  %v1789_v49 = vmax.f32 %v1773_v61, 0.0  ;;  %v1828_v63 = vadd.f32 %v1812_v23, %v1788_v44 }
 0x193   : > { %2231 = vst [vmem:[%s3450_s19 + $0x18] sm:$0xff] %v2207_v47   ;;  %v1831_v55 = vadd.f32 %v1815_v24, %v1791_v22 }
 0x194   : > { %2230 = vst [vmem:[%s3450_s19 + $0x10] sm:$0xff] %v2202_v50   ;;  %v1829_v11 = vadd.f32 %v1813_v10, %v1789_v49 }
 0x195   : > { %v2227_v34 = vpack.c.bf16 %v1831_v55, %v1830_v8 }
 0x196   : > { %v2222_v45 = vpack.c.bf16 %v1829_v11, %v1828_v63 }
 0x197   : > { %2235 = vst [vmem:[%s3450_s19 + $0x38] sm:$0xff] %v2227_v34  }
 0x198   : > { %2234 = vst [vmem:[%s3450_s19 + $0x30] sm:$0xff] %v2222_v45  }
 0x199 PF: > { %s13_s12 = sadd.s32 1, %s2765_s12  }
 0x19a   : > { %p10_p4 = scmp.ge.s32.totalorder %s13_s12, 6  }
 0x19c   :  { %12 = sbr.rel (!%p10_p4) target bundleno = 1 (0x1), region = 66 }

</bundles_post_ra>
